<compile_context>
chip_gen: v7x
topology: tpu7x:2x2x1
jax: 0.10.0
libtpu: 0.0.40
codegen_flags: <defaults>
</compile_context>

<pallas_src>
import jax
import jax.numpy as jnp
from jax import lax
from jax.experimental import pallas as pl
from jax.experimental.pallas import tpu as pltpu


def _round_up(n, m):
    return ((n + m - 1) // m) * m


def _pick_tile_b(batch, preferred=4096):
    """Batch tile: lane-aligned, clamped for small B, >= 2 grid steps for big B."""
    b_lane = _round_up(batch, 128)          # small-batch clamp
    if b_lane <= 256:
        return b_lane
    # Aim for at least two grid steps (v7x has two TensorCores sharing the
    # "parallel" grid axis); keep tiles multiples of 256 (MXU friendly).
    half = _round_up((batch + 1) // 2, 256)
    return int(min(preferred, half, _round_up(batch, 256)))


def _mlp_kernel(x_ref, w1_ref, w2_ref, w3_ref, ex_ref, o_ref):
    # x_ref : (TILE_B, K) f32   streamed per tile, natural layout (cast in-kernel)
    # w1_ref: (H, K) bf16 ; w2_ref/w3_ref: (H, H) bf16   VMEM-resident weights
    # ex_ref: (H, 8) f32 packed [b1 | b2 | b3 | w4 | b4_bcast | 0 | 0 | 0]
    # o_ref : (1, TILE_B) f32   lane-dense output row
    ex = ex_ref[...]
    b1 = ex[:, 0:1]
    b2 = ex[:, 1:2]
    b3 = ex[:, 2:3]
    w4 = ex[:, 3:4]          # (H, 1)
    b4 = ex[0:1, 4:5]        # (1, 1)

    xb = x_ref[...].astype(jnp.bfloat16)     # bf16 cast on the VPU, no HBM pass

    # fc1 + relu: W1(H,K) contracted with x(TILE_B,K) on K ("NT" matmul) gives
    # the transposed (H, TILE_B) activation directly -> batch stays on lanes.
    h = lax.dot_general(w1_ref[...], xb,
                        dimension_numbers=(((1,), (1,)), ((), ())),
                        preferred_element_type=jnp.float32) + b1
    h = jnp.maximum(h, 0.0)

    # fc2 + relu (bf16 MXU inputs, f32 accumulation, f32 epilogue)
    h = jnp.dot(w2_ref[...], h.astype(jnp.bfloat16),
                preferred_element_type=jnp.float32) + b2
    h = jnp.maximum(h, 0.0)

    # fc3 + relu
    h = jnp.dot(w3_ref[...], h.astype(jnp.bfloat16),
                preferred_element_type=jnp.float32) + b3
    h = jnp.maximum(h, 0.0)

    # dropout: identity in eval mode.
    # TODO(synk): training-mode dropout (pltpu.prng_seed + prng_random_bits mask
    # + 1/(1-p) scale) not emitted here.

    # fc4 + sigmoid: VPU multiply + sublane (XLU) reduce, lane-dense output row.
    logits = jnp.sum(h * w4, axis=0, keepdims=True) + b4
    o_ref[...] = 1.0 / (1.0 + jnp.exp(-logits))


@jax.jit
def rna_classifier_3_forward(x, kparams):
    """x: (B, input_size) f32. kparams: output of prepare_params(). Returns (B, 1) f32."""
    B, K = x.shape
    H, Kw = kparams["w1"].shape
    assert K == Kw, "input feature dim does not match fc1 weight"

    tile_b = _pick_tile_b(B)
    num_tiles = -(-B // tile_b)
    B_pad = num_tiles * tile_b
    if B_pad != B:
        # Only the ragged remainder tile is padded; for B % tile_b == 0 nothing
        # is materialized on the host at all.
        x = jnp.pad(x, ((0, B_pad - B), (0, 0)))

    flops = 2 * B_pad * (K * H + 2 * H * H + H)
    bytes_accessed = (B_pad * K * 4
                      + kparams["w1"].size * 2
                      + kparams["w2"].size * 2
                      + kparams["w3"].size * 2
                      + kparams["extras"].size * 4
                      + B_pad * 4)

    out = pl.pallas_call(
        _mlp_kernel,
        out_shape=jax.ShapeDtypeStruct((1, B_pad), jnp.float32),
        grid=(num_tiles,),
        in_specs=[
            pl.BlockSpec((tile_b, K), lambda i: (i, 0)),   # x streams per tile
            pl.BlockSpec((H, K), lambda i: (0, 0)),        # weights stay resident
            pl.BlockSpec((H, H), lambda i: (0, 0)),
            pl.BlockSpec((H, H), lambda i: (0, 0)),
            pl.BlockSpec((H, 8), lambda i: (0, 0)),
        ],
        out_specs=pl.BlockSpec((1, tile_b), lambda i: (0, i)),
        compiler_params=pltpu.CompilerParams(dimension_semantics=("parallel",)),
        cost_estimate=pl.CostEstimate(flops=flops, transcendentals=B_pad,
                                      bytes_accessed=bytes_accessed),
    )(x, kparams["w1"], kparams["w2"], kparams["w3"], kparams["extras"])

    return out[0, :B].reshape(B, 1)


def init_params(key, input_size, hidden_size=128):
    """PyTorch nn.Linear layout: w_i is (out, in), b_i is (out,), uniform(+-1/sqrt(fan_in))."""
    dims = [(hidden_size, input_size), (hidden_size, hidden_size),
            (hidden_size, hidden_size), (1, hidden_size)]
    params = {}
    for i, (fan_out, fan_in) in enumerate(dims, start=1):
        key, kw, kb = jax.random.split(key, 3)
        bound = 1.0 / (fan_in ** 0.5)
        params[f"w{i}"] = jax.random.uniform(kw, (fan_out, fan_in), jnp.float32,
                                             -bound, bound)
        params[f"b{i}"] = jax.random.uniform(kb, (fan_out,), jnp.float32,
                                             -bound, bound)
    return params


def prepare_params(params):
    """Convert PyTorch-layout params into the kernel layout (done once on the host)."""
    H, _K = params["w1"].shape
    w1 = params["w1"].astype(jnp.bfloat16)           # no K padding needed
    w2 = params["w2"].astype(jnp.bfloat16)
    w3 = params["w3"].astype(jnp.bfloat16)
    # Pack [b1 | b2 | b3 | w4 | b4_bcast] into one (H, 8) f32 buffer.
    extras = jnp.zeros((H, 8), jnp.float32)
    extras = extras.at[:, 0].set(params["b1"])
    extras = extras.at[:, 1].set(params["b2"])
    extras = extras.at[:, 2].set(params["b3"])
    extras = extras.at[:, 3].set(params["w4"][0])
    extras = extras.at[:, 4].set(jnp.full((H,), params["b4"][0], jnp.float32))
    return {"w1": w1, "w2": w2, "w3": w3, "extras": extras}


def reference_forward(x, params):
    """Pure-JAX reference mirroring the kernel's bf16-in / f32-accumulate numerics."""
    def linear_relu(h, w, b):
        y = jnp.dot(h.astype(jnp.bfloat16), w.T.astype(jnp.bfloat16),
                    preferred_element_type=jnp.float32) + b
        return jnp.maximum(y, 0.0)

    h = linear_relu(x, params["w1"], params["b1"])
    h = linear_relu(h, params["w2"], params["b2"])
    h = linear_relu(h, params["w3"], params["b3"])
    logits = jnp.sum(h * params["w4"][0], axis=-1, keepdims=True) + params["b4"]
    return 1.0 / (1.0 + jnp.exp(-logits))


if __name__ == "__main__":
    key = jax.random.PRNGKey(0)
    k_params, k_x = jax.random.split(key)

    batch = 8
    input_size = 32
    hidden_size = 128

    params = init_params(k_params, input_size, hidden_size)
    kparams = prepare_params(params)
    x = jax.random.normal(k_x, (batch, input_size), jnp.float32)

    out = jax.block_until_ready(rna_classifier_3_forward(x, kparams))

    ref = reference_forward(x, params)
    assert out.shape == (batch, 1)
    assert jnp.allclose(out, ref, atol=1e-3, rtol=1e-3), "mismatch vs reference"

    print("KERNEL_OK")
</pallas_src>

<mosaic_0001>
module attributes {stable_mosaic.version = 11 : i64} {
  func.func @_mlp_kernel(%arg0: i32, %arg1: memref<128x32xf32, #tpu.memory_space<vmem>>, %arg2: memref<128x32xbf16, #tpu.memory_space<vmem>>, %arg3: memref<128x128xbf16, #tpu.memory_space<vmem>>, %arg4: memref<128x128xbf16, #tpu.memory_space<vmem>>, %arg5: memref<128x8xf32, #tpu.memory_space<vmem>>, %arg6: memref<1x128xf32, #tpu.memory_space<vmem>>) attributes {dimension_semantics = [#tpu.dimension_semantics<parallel>], iteration_bounds = array<i64: 1>, scalar_prefetch = 0 : i64, scratch_operands = 0 : i64, tpu.core_type = #tpu.core_type<tc>, window_params = [{transform_indices = @transform_0, window_bounds = array<i64: 128, 32>}, {pipeline_mode = #tpu.pipeline_mode<synchronous>, transform_indices = @transform_1, window_bounds = array<i64: 128, 32>}, {pipeline_mode = #tpu.pipeline_mode<synchronous>, transform_indices = @transform_2, window_bounds = array<i64: 128, 128>}, {pipeline_mode = #tpu.pipeline_mode<synchronous>, transform_indices = @transform_3, window_bounds = array<i64: 128, 128>}, {pipeline_mode = #tpu.pipeline_mode<synchronous>, transform_indices = @transform_4, window_bounds = array<i64: 128, 8>}, {transform_indices = @transform_5, window_bounds = array<i64: 1, 128>}]} {
    %c0 = arith.constant 0 : index
    %c0_0 = arith.constant 0 : index
    %0 = vector.load %arg5[%c0, %c0_0] : memref<128x8xf32, #tpu.memory_space<vmem>>, vector<128x8xf32>
    %1 = vector.extract_strided_slice %0 {offsets = [0, 0], sizes = [128, 1], strides = [1, 1]} : vector<128x8xf32> to vector<128x1xf32>
    %2 = vector.extract_strided_slice %0 {offsets = [0, 1], sizes = [128, 1], strides = [1, 1]} : vector<128x8xf32> to vector<128x1xf32>
    %3 = vector.extract_strided_slice %0 {offsets = [0, 2], sizes = [128, 1], strides = [1, 1]} : vector<128x8xf32> to vector<128x1xf32>
    %4 = vector.extract_strided_slice %0 {offsets = [0, 3], sizes = [128, 1], strides = [1, 1]} : vector<128x8xf32> to vector<128x1xf32>
    %5 = vector.extract_strided_slice %0 {offsets = [0, 4], sizes = [1, 1], strides = [1, 1]} : vector<128x8xf32> to vector<1x1xf32>
    %c0_1 = arith.constant 0 : index
    %c0_2 = arith.constant 0 : index
    %6 = vector.load %arg1[%c0_1, %c0_2] : memref<128x32xf32, #tpu.memory_space<vmem>>, vector<128x32xf32>
    %7 = arith.truncf %6 : vector<128x32xf32> to vector<128x32xbf16>
    %c0_3 = arith.constant 0 : index
    %c0_4 = arith.constant 0 : index
    %8 = vector.load %arg2[%c0_3, %c0_4] : memref<128x32xbf16, #tpu.memory_space<vmem>>, vector<128x32xbf16>
    %cst = arith.constant dense<0.000000e+00> : vector<128x128xf32>
    %9 = tpu.matmul %8, %7, %cst {dimension_numbers = #tpu.dot_dimension_numbers<[1], [1], [0], [0], [0, 0, 1, 0], [], []>} : vector<128x32xbf16>, vector<128x32xbf16>, vector<128x128xf32> -> vector<128x128xf32>
    %10 = vector.broadcast %1 : vector<128x1xf32> to vector<128x128xf32>
    %11 = arith.addf %9, %10 : vector<128x128xf32>
    %cst_5 = arith.constant 0.000000e+00 : f32
    %12 = vector.broadcast %cst_5 : f32 to vector<128x128xf32>
    %13 = arith.maximumf %11, %12 : vector<128x128xf32>
    %c0_6 = arith.constant 0 : index
    %c0_7 = arith.constant 0 : index
    %14 = vector.load %arg3[%c0_6, %c0_7] : memref<128x128xbf16, #tpu.memory_space<vmem>>, vector<128x128xbf16>
    %15 = arith.truncf %13 : vector<128x128xf32> to vector<128x128xbf16>
    %cst_8 = arith.constant dense<0.000000e+00> : vector<128x128xf32>
    %16 = tpu.matmul %14, %15, %cst_8 {dimension_numbers = #tpu.dot_dimension_numbers<[1], [0], [0], [1], [0, 0, 1, 1], [], []>} : vector<128x128xbf16>, vector<128x128xbf16>, vector<128x128xf32> -> vector<128x128xf32>
    %17 = vector.broadcast %2 : vector<128x1xf32> to vector<128x128xf32>
    %18 = arith.addf %16, %17 : vector<128x128xf32>
    %cst_9 = arith.constant 0.000000e+00 : f32
    %19 = vector.broadcast %cst_9 : f32 to vector<128x128xf32>
    %20 = arith.maximumf %18, %19 : vector<128x128xf32>
    %c0_10 = arith.constant 0 : index
    %c0_11 = arith.constant 0 : index
    %21 = vector.load %arg4[%c0_10, %c0_11] : memref<128x128xbf16, #tpu.memory_space<vmem>>, vector<128x128xbf16>
    %22 = arith.truncf %20 : vector<128x128xf32> to vector<128x128xbf16>
    %cst_12 = arith.constant dense<0.000000e+00> : vector<128x128xf32>
    %23 = tpu.matmul %21, %22, %cst_12 {dimension_numbers = #tpu.dot_dimension_numbers<[1], [0], [0], [1], [0, 0, 1, 1], [], []>} : vector<128x128xbf16>, vector<128x128xbf16>, vector<128x128xf32> -> vector<128x128xf32>
    %24 = vector.broadcast %3 : vector<128x1xf32> to vector<128x128xf32>
    %25 = arith.addf %23, %24 : vector<128x128xf32>
    %cst_13 = arith.constant 0.000000e+00 : f32
    %26 = vector.broadcast %cst_13 : f32 to vector<128x128xf32>
    %27 = arith.maximumf %25, %26 : vector<128x128xf32>
    %28 = vector.broadcast %4 : vector<128x1xf32> to vector<128x128xf32>
    %29 = arith.mulf %27, %28 : vector<128x128xf32>
    %cst_14 = arith.constant dense<0.000000e+00> : vector<128xf32>
    %30 = vector.multi_reduction <add>, %29, %cst_14 [0] : vector<128x128xf32> to vector<128xf32>
    %31 = vector.shape_cast %30 : vector<128xf32> to vector<1x128xf32>
    %32 = vector.broadcast %5 : vector<1x1xf32> to vector<1x128xf32>
    %33 = arith.addf %31, %32 : vector<1x128xf32>
    %cst_15 = arith.constant 0.000000e+00 : f32
    %34 = vector.broadcast %cst_15 : f32 to vector<1x128xf32>
    %35 = arith.subf %34, %33 : vector<1x128xf32>
    %36 = math.exp %35 : vector<1x128xf32>
    %cst_16 = arith.constant 1.000000e+00 : f32
    %37 = vector.broadcast %cst_16 : f32 to vector<1x128xf32>
    %38 = arith.addf %37, %36 : vector<1x128xf32>
    %cst_17 = arith.constant 1.000000e+00 : f32
    %39 = vector.broadcast %cst_17 : f32 to vector<1x128xf32>
    %40 = arith.divf %39, %38 : vector<1x128xf32>
    %c0_18 = arith.constant 0 : index
    %c0_19 = arith.constant 0 : index
    %41 = vector.load %arg6[%c0_18, %c0_19] : memref<1x128xf32, #tpu.memory_space<vmem>>, vector<1x128xf32>
    tpu.vector_store %arg6[%c0_18, %c0_19], %40 {strides = array<i32>} : memref<1x128xf32, #tpu.memory_space<vmem>>, vector<1x128xf32>,
    return
  }
  func.func @transform_0(%arg0: i32) -> (i32, i32) {
    %c0_i32 = arith.constant 0 : i32
    %c0_i32_0 = arith.constant 0 : i32
    return %arg0, %c0_i32 : i32, i32
  }
  func.func @transform_1(%arg0: i32) -> (i32, i32) {
    %c0_i32 = arith.constant 0 : i32
    %c0_i32_0 = arith.constant 0 : i32
    %c0_i32_1 = arith.constant 0 : i32
    return %c0_i32, %c0_i32_0 : i32, i32
  }
  func.func @transform_2(%arg0: i32) -> (i32, i32) {
    %c0_i32 = arith.constant 0 : i32
    %c0_i32_0 = arith.constant 0 : i32
    %c0_i32_1 = arith.constant 0 : i32
    return %c0_i32, %c0_i32_0 : i32, i32
  }
  func.func @transform_3(%arg0: i32) -> (i32, i32) {
    %c0_i32 = arith.constant 0 : i32
    %c0_i32_0 = arith.constant 0 : i32
    %c0_i32_1 = arith.constant 0 : i32
    return %c0_i32, %c0_i32_0 : i32, i32
  }
  func.func @transform_4(%arg0: i32) -> (i32, i32) {
    %c0_i32 = arith.constant 0 : i32
    %c0_i32_0 = arith.constant 0 : i32
    %c0_i32_1 = arith.constant 0 : i32
    return %c0_i32, %c0_i32_0 : i32, i32
  }
  func.func @transform_5(%arg0: i32) -> (i32, i32) {
    %c0_i32 = arith.constant 0 : i32
    %c0_i32_0 = arith.constant 0 : i32
    return %c0_i32, %arg0 : i32, i32
  }
}

</mosaic_0001>

<bundles_post_ra>
// kernel: rna_classifier_3_forward.1
= control target key start
LH: loop header
LB: loop body
LE: loop exit
PB: predicated region body
PF: predicated region fallthrough
CT: control target
= control target key end

     0   :  { %vm197_vm0 = vcmask 261120   ;;  %v1203_v3 = vmov 0   ;;  %v1204_v58 = vmov 1   ;;  %s1530_s0 = inlined_call_operand.vmem [shape: f32[128,32], index: 0, kind: input, shape index: {}]   ;;  %s1531_s1 = inlined_call_operand.vmem [shape: bf16[128,32], index: 1, kind: input, shape index: {}]   ;;  %s1532_s4 = inlined_call_operand.vmem [shape: f32[128,8], index: 4, kind: input, shape index: {}]   ;;  %s1533_s2 = inlined_call_operand.vmem [shape: bf16[128,128], index: 2, kind: input, shape index: {}]   ;;  %s1534_s3 = inlined_call_operand.vmem [shape: bf16[128,128], index: 3, kind: input, shape index: {}]   ;;  %s1535_s5 = inlined_call_operand.vmem [shape: f32[1,128], index: 5, kind: output, shape index: {}]  }
   0x1   :  { %v37_v0 = vld [vmem:[%s1530_s0] sm:$0xff]  ;;  %v38_v1 = vld [vmem:[%s1530_s0 + $0x8] sm:$0xff]  ;;  %v39_v2 = vld [vmem:[%s1530_s0 + $0x10] sm:$0xff]  ;;  %1163 = vset.pattern.permute.xlu0 %v1203_v3  ;;  %1164 = vset.pattern.permute.xlu1 %v1203_v3 }
   0x2   :  { %v53_v4 = vpack.c.bf16 %v38_v1, %v37_v0  ;;  %v40_v5 = vld [vmem:[%s1530_s0 + $0x18] sm:$0xff]  ;;  %v41_v8 = vld [vmem:[%s1530_s0 + $0x20] sm:$0xff]  ;;  %v42_v9 = vld [vmem:[%s1530_s0 + $0x28] sm:$0xff] }
   0x3   :  { %v54_v6 = vpack.c.bf16 %v40_v5, %v39_v2  ;;  %v1175_v10 = vld [vmem:[%s1531_s1] sm:$0xff]   ;;  %v55_v12 = vpack.c.bf16 %v42_v9, %v41_v8  ;;  %v1273_v14 = vld [vmem:[%s1532_s4 + $0x10] sm:$0xff]  ;;  %v44_v16 = vld [vmem:[%s1530_s0 + $0x38] sm:$0xff] }
   0x4   :  { %1150 = vmatprep.subr.msk.bf16.mxu0 %vm197_vm0, %v53_v4  ;;  %v223_v7 = vsel %vm197_vm0, %v53_v4, 0  ;;  %1070 = vmatprep.mubr.msk.bf16.mxu0 %vm197_vm0, %v1175_v10  ;;  %v1268_v13 = vld [vmem:[%s1532_s4] sm:$0xff]  ;;  %v43_v15 = vld [vmem:[%s1530_s0 + $0x30] sm:$0xff]  ;;  %v1286_v17 = vld [vmem:[%s1532_s4 + $0x8] sm:$0xff] }
   0x5   :  { %1055 = vmatpush3.bf16.xpose.msra.mxu0 %v223_v7  ;;  %v226_v11 = vsel %vm197_vm0, %v54_v6, 0  ;;  %79 = vperm.xlu0 %1163, %v1268_v13   ;;  %v1291_v18 = vld [vmem:[%s1532_s4 + $0x18] sm:$0xff]  ;;  %v229_v19 = vsel %vm197_vm0, %v55_v12, 0  ;;  %v56_v20 = vpack.c.bf16 %v44_v16, %v43_v15  ;;  %v1299_v21 = vld [vmem:[%s1532_s4 + $0x20] sm:$0xff]  ;;  %v1304_v22 = vld [vmem:[%s1532_s4 + $0x28] sm:$0xff] }
   0x6   :  { %1151 = vmatprep.subr.msk.bf16.mxu0 %vm197_vm0, %v54_v6  ;;  %89 = vperm.xlu1 %1164, %v1273_v14   ;;  %v45_v23 = vld [vmem:[%s1530_s0 + $0x40] sm:$0xff]  ;;  %v46_v24 = vld [vmem:[%s1530_s0 + $0x48] sm:$0xff]  ;;  %v1318_v25 = vld [vmem:[%s1532_s4 + $0x30] sm:$0xff] }
   0x7   :  { %v1323_v26 = vld [vmem:[%s1532_s4 + $0x38] sm:$0xff]  ;;  %v232_v27 = vsel %vm197_vm0, %v56_v20, 0  ;;  %v57_v28 = vpack.c.bf16 %v46_v24, %v45_v23  ;;  %v1331_v29 = vld [vmem:[%s1532_s4 + $0x40] sm:$0xff]  ;;  %v1336_v30 = vld [vmem:[%s1532_s4 + $0x48] sm:$0xff] }
   0x8   :  { %v47_v31 = vld [vmem:[%s1530_s0 + $0x50] sm:$0xff]  ;;  %v48_v32 = vld [vmem:[%s1530_s0 + $0x58] sm:$0xff]  ;;  %v1363_v37 = vld [vmem:[%s1532_s4 + $0x60] sm:$0xff] }
   0x9   :  { %84 = vperm.xlu0 %1163, %v1286_v17   ;;  %v1350_v33 = vld [vmem:[%s1532_s4 + $0x50] sm:$0xff]  ;;  %v1355_v34 = vld [vmem:[%s1532_s4 + $0x58] sm:$0xff]  ;;  %v235_v35 = vsel %vm197_vm0, %v57_v28, 0  ;;  %v58_v36 = vpack.c.bf16 %v48_v32, %v47_v31  ;;  %v1368_v38 = vld [vmem:[%s1532_s4 + $0x68] sm:$0xff] }
   0xa   :  { %94 = vperm.xlu1 %1164, %v1291_v18   ;;  %v49_v39 = vld [vmem:[%s1530_s0 + $0x60] sm:$0xff]  ;;  %v50_v40 = vld [vmem:[%s1530_s0 + $0x68] sm:$0xff]  ;;  %v1382_v41 = vld [vmem:[%s1532_s4 + $0x70] sm:$0xff] }
   0xb   :  { %v1387_v42 = vld [vmem:[%s1532_s4 + $0x78] sm:$0xff]  ;;  %v238_v43 = vsel %vm197_vm0, %v58_v36, 0  ;;  %v59_v44 = vpack.c.bf16 %v50_v40, %v49_v39  ;;  %v51_v45 = vld [vmem:[%s1530_s0 + $0x70] sm:$0xff]  ;;  %v1176_v50 = vld [vmem:[%s1531_s1 + $0x8] sm:$0xff]  }
   0xc   :  { %v52_v46 = vld [vmem:[%s1530_s0 + $0x78] sm:$0xff]  ;;  %v1177_v51 = vld [vmem:[%s1531_s1 + $0x10] sm:$0xff]   ;;  %v1179_v53 = vld [vmem:[%s1531_s1 + $0x20] sm:$0xff]  }
   0xd   :  { %1057 = vmatpush3.bf16.xpose.msra.mxu0 %v226_v11  ;;  %99 = vperm.xlu0 %1163, %v1299_v21   ;;  %v241_v47 = vsel %vm197_vm0, %v59_v44, 0  ;;  %v60_v48 = vpack.c.bf16 %v52_v46, %v51_v45  ;;  %v1178_v52 = vld [vmem:[%s1531_s1 + $0x18] sm:$0xff]   ;;  %v1180_v54 = vld [vmem:[%s1531_s1 + $0x28] sm:$0xff]   ;;  %v1181_v55 = vld [vmem:[%s1531_s1 + $0x30] sm:$0xff]  }
   0xe   :  { %1152 = vmatprep.subr.msk.bf16.mxu0 %vm197_vm0, %v55_v12  ;;  %104 = vperm.xlu1 %1164, %v1304_v22   ;;  %v1182_v56 = vld [vmem:[%s1531_s1 + $0x38] sm:$0xff]   ;;  %v1183_v57 = vld [vmem:[%s1533_s2] sm:$0xff]  }
   0xf   :  { %v244_v49 = vsel %vm197_vm0, %v60_v48, 0  ;;  %1102 = vmatprep.mubr.bf16.mxu1 %v1183_v57 }
  0x11   :  { %109 = vperm.xlu0 %1163, %v1318_v25  }
  0x12   :  { %114 = vperm.xlu1 %1164, %v1323_v26  }
  0x15   :  { %1059 = vmatpush3.bf16.xpose.msra.mxu0 %v229_v19  ;;  %119 = vperm.xlu0 %1163, %v1331_v29  }
  0x16   :  { %1153 = vmatprep.subr.msk.bf16.mxu0 %vm197_vm0, %v56_v20  ;;  %124 = vperm.xlu1 %1164, %v1336_v30  }
  0x19   :  { %129 = vperm.xlu0 %1163, %v1350_v33  }
  0x1a   :  { %134 = vperm.xlu1 %1164, %v1355_v34  }
  0x1d   :  { %1061 = vmatpush3.bf16.xpose.msra.mxu0 %v232_v27  ;;  %139 = vperm.xlu0 %1163, %v1363_v37  }
  0x1e   :  { %1154 = vmatprep.subr.msk.bf16.mxu0 %vm197_vm0, %v57_v28  ;;  %144 = vperm.xlu1 %1164, %v1368_v38  }
  0x21   :  { %149 = vperm.xlu0 %1163, %v1382_v41  }
  0x22   :  { %154 = vperm.xlu1 %1164, %v1387_v42  }
  0x25   :  { %1063 = vmatpush3.bf16.xpose.msra.mxu0 %v235_v35  ;;  %1165 = vset.pattern.permute.xlu0 %v1204_v58 }
  0x26   :  { %1155 = vmatprep.subr.msk.bf16.mxu0 %vm197_vm0, %v58_v36  ;;  %1166 = vset.pattern.permute.xlu1 %v1204_v58 }
  0x27   :  { %388 = vperm.xlu1 %1166, %v1286_v17   ;;  %384 = vperm.xlu0 %1165, %v1268_v13  }
  0x2b   :  { %392 = vperm.xlu1 %1166, %v1273_v14   ;;  %396 = vperm.xlu0 %1165, %v1291_v18  }
  0x2d   :  { %1065 = vmatpush3.bf16.xpose.msra.mxu0 %v238_v43 }
  0x2e   :  { %1156 = vmatprep.subr.msk.bf16.mxu0 %vm197_vm0, %v59_v44 }
  0x2f   :  { %400 = vperm.xlu1 %1166, %v1299_v21   ;;  %404 = vperm.xlu0 %1165, %v1304_v22  }
  0x33   :  { %408 = vperm.xlu1 %1166, %v1318_v25   ;;  %412 = vperm.xlu0 %1165, %v1323_v26  }
  0x35   :  { %1067 = vmatpush3.bf16.xpose.msra.mxu0 %v241_v47 }
  0x36   :  { %1157 = vmatprep.subr.msk.bf16.mxu0 %vm197_vm0, %v60_v48 }
  0x37   :  { %416 = vperm.xlu1 %1166, %v1331_v29   ;;  %420 = vperm.xlu0 %1165, %v1336_v30  }
  0x3b   :  { %424 = vperm.xlu1 %1166, %v1350_v33   ;;  %428 = vperm.xlu0 %1165, %v1355_v34  }
  0x3d   :  { %1069 = vmatpush3.bf16.xpose.msra.mxu0 %v244_v49 }
  0x3f   :  { %432 = vperm.xlu1 %1166, %v1363_v37   ;;  %436 = vperm.xlu0 %1165, %v1368_v38  }
  0x43   :  { %440 = vperm.xlu1 %1166, %v1382_v41   ;;  %444 = vperm.xlu0 %1165, %v1387_v42  }
  0x44   :  { %1071 = vmatmul.mubr.msk.bf16.vlgmr.msra.gmra.mrb[0].mxu0 %vm197_vm0, %v1176_v50 }
  0x45   :  { %1074 = vmatprep.mubr.msk.bf16.mxu0 %vm197_vm0, %v1177_v51 }
  0x4c   :  { %1075 = vmatmul.mubr.msk.bf16.gmra.mrb[4].mxu0 %vm197_vm0, %v1178_v52 }
  0x4d   :  { %1078 = vmatprep.mubr.msk.bf16.mxu0 %vm197_vm0, %v1179_v53 }
  0x54   :  { %1079 = vmatmul.mubr.msk.bf16.gmra.mrb[8].mxu0 %vm197_vm0, %v1180_v54 }
  0x55   :  { %1082 = vmatprep.mubr.msk.bf16.mxu0 %vm197_vm0, %v1181_v55 }
  0x5c   :  { %1083 = vmatmul.mubr.msk.bf16.gmra.mrb[12].mxu0 %vm197_vm0, %v1182_v56 }
  0x84   :  { %v80_v59 = vpop.permute.xlu0 %79 }
  0x85   :  { %v90_v60 = vpop.permute.xlu1 %89 }
  0x88   :  { %v85_v61 = vpop.permute.xlu0 %84 }
  0x89   :  { %v95_v62 = vpop.permute.xlu1 %94 }
  0x8c   :  { %v100_v63 = vpop.permute.xlu0 %99 }
  0x8d   :  { %v105_v0 = vpop.permute.xlu1 %104 }
  0x90   :  { %v110_v1 = vpop.permute.xlu0 %109 }
  0x91   :  { %v115_v5 = vpop.permute.xlu1 %114 }
  0x94   :  { %v120_v15 = vpop.permute.xlu0 %119 }
  0x95   :  { %v125_v23 = vpop.permute.xlu1 %124 }
  0x98   :  { %v130_v40 = vpop.permute.xlu0 %129 }
  0x99   :  { %v135_v46 = vpop.permute.xlu1 %134 }
  0x9c   :  { %v140_v54 = vpop.permute.xlu0 %139 }
 0x117   :  { %v1072_v2 = vpop.f32.mrb[0].mxu0 }
 0x118   :  { %v289_v3 = vadd.f32 %v1072_v2, %v90_v60  ;;  %v280_v4 = vpop.f32.mrb[1].mxu0  ;;  %v150_v2 = vpop.permute.xlu0 %149 }
 0x119   :  { %v281_v6 = vadd.f32 %v280_v4, %v80_v59  ;;  %v1073_v7 = vpop.f32.mrb[2].mxu0  ;;  %v145_v59 = vpop.permute.xlu1 %144 }
 0x11a   :  { %v292_v8 = vadd.f32 %v1073_v7, %v95_v62  ;;  %v283_v9 = vpop.f32.mrb[3].mxu0  ;;  %v345_v11 = vmax.f32 %v289_v3, 0.0 }
 0x11b   :  { %v284_v10 = vadd.f32 %v283_v9, %v85_v61  ;;  %v343_v16 = vmax.f32 %v281_v6, 0.0 }
 0x11c   :  { %v346_v12 = vmax.f32 %v292_v8, 0.0 }
 0x11d   :  { %v344_v19 = vmax.f32 %v284_v10, 0.0  ;;  %v155_v7 = vpop.permute.xlu1 %154 }
 0x11e   :  { %v376_v20 = vpack.c.bf16 %v346_v12, %v345_v11 }
 0x11f   :  { %v1076_v24 = vpop.f32.mrb[4].mxu0  ;;  %v375_v27 = vpack.c.bf16 %v344_v19, %v343_v16 }
 0x120   :  { %v305_v28 = vadd.f32 %v1076_v24, %v110_v1  ;;  %v296_v31 = vpop.f32.mrb[5].mxu0 }
 0x121   :  { %v297_v32 = vadd.f32 %v296_v31, %v100_v63  ;;  %v1077_v35 = vpop.f32.mrb[6].mxu0  ;;  %1086 = vmatprep.subr.bf16.mxu1 %v375_v27  ;;  %v1186_v31 = vld [vmem:[%s1533_s2 + $0x18] sm:$0xff]  }
 0x122   :  { %v308_v36 = vadd.f32 %v1077_v35, %v115_v5  ;;  %v299_v39 = vpop.f32.mrb[7].mxu0  ;;  %1087 = vmatpush3.bf16.msra.mxu1 %v375_v27  ;;  %v349_v44 = vmax.f32 %v305_v28, 0.0  ;;  %v1184_v27 = vld [vmem:[%s1533_s2 + $0x8] sm:$0xff]   ;;  %v1185_v28 = vld [vmem:[%s1533_s2 + $0x10] sm:$0xff]  }
 0x123   :  { %v300_v43 = vadd.f32 %v299_v39, %v105_v0  ;;  %1088 = vmatprep.subr.bf16.mxu1 %v376_v20  ;;  %v347_v47 = vmax.f32 %v297_v32, 0.0  ;;  %v1187_v32 = vld [vmem:[%s1533_s2 + $0x20] sm:$0xff]   ;;  %v1188_v35 = vld [vmem:[%s1533_s2 + $0x28] sm:$0xff]   ;;  %v1190_v39 = vld [vmem:[%s1533_s2 + $0x38] sm:$0xff]  }
 0x124   :  { %v350_v45 = vmax.f32 %v308_v36, 0.0  ;;  %v1189_v36 = vld [vmem:[%s1533_s2 + $0x30] sm:$0xff]  }
 0x125   :  { %v348_v48 = vmax.f32 %v300_v43, 0.0  ;;  %v1205_v43 = vmov 2  }
 0x126   :  { %v378_v49 = vpack.c.bf16 %v350_v45, %v349_v44  ;;  %1089 = vmatpush3.bf16.msra.mxu1 %v376_v20  ;;  %1167 = vset.pattern.permute.xlu1 %v1205_v43  ;;  %v1206_v44 = vmov 3  }
 0x127   :  { %v377_v50 = vpack.c.bf16 %v348_v48, %v347_v47  ;;  %v1080_v51 = vpop.f32.mrb[8].mxu0  ;;  %1168 = vset.pattern.permute.xlu0 %v1205_v43  ;;  %633 = vperm.xlu1 %1167, %v1268_v13  }
 0x128   :  { %v321_v52 = vadd.f32 %v1080_v51, %v130_v40  ;;  %v312_v53 = vpop.f32.mrb[9].mxu0  ;;  %v1191_v40 = vld [vmem:[%s1534_s3] sm:$0xff]   ;;  %637 = vperm.xlu0 %1168, %v1286_v17  }
 0x129   :  { %v313_v55 = vadd.f32 %v312_v53, %v120_v15  ;;  %v1081_v56 = vpop.f32.mrb[10].mxu0  ;;  %1090 = vmatprep.subr.bf16.mxu1 %v377_v50 }
 0x12a   :  { %v324_v57 = vadd.f32 %v1081_v56, %v135_v46  ;;  %v315_v58 = vpop.f32.mrb[11].mxu0  ;;  %1091 = vmatpush3.bf16.msra.mxu1 %v377_v50  ;;  %v353_v61 = vmax.f32 %v321_v52, 0.0 }
 0x12b   :  { %v316_v60 = vadd.f32 %v315_v58, %v125_v23  ;;  %1092 = vmatprep.subr.bf16.mxu1 %v378_v49  ;;  %v351_v63 = vmax.f32 %v313_v55, 0.0  ;;  %641 = vperm.xlu1 %1167, %v1273_v14  }
 0x12c   :  { %v354_v62 = vmax.f32 %v324_v57, 0.0  ;;  %1169 = vset.pattern.permute.xlu0 %v1206_v44 }
 0x12d   :  { %v352_v0 = vmax.f32 %v316_v60, 0.0  ;;  %858 = vperm.xlu0 %1169, %v1268_v13  }
 0x12e   :  { %v380_v1 = vpack.c.bf16 %v354_v62, %v353_v61  ;;  %1093 = vmatpush3.bf16.msra.mxu1 %v378_v49 }
 0x12f   :  { %v379_v3 = vpack.c.bf16 %v352_v0, %v351_v63  ;;  %v1084_v4 = vpop.f32.mrb[12].mxu0  ;;  %645 = vperm.xlu1 %1167, %v1291_v18  }
 0x130   :  { %v337_v5 = vadd.f32 %v1084_v4, %v150_v2  ;;  %v328_v6 = vpop.f32.mrb[13].mxu0 }
 0x131   :  { %v329_v8 = vadd.f32 %v328_v6, %v140_v54  ;;  %v1085_v9 = vpop.f32.mrb[14].mxu0  ;;  %1094 = vmatprep.subr.bf16.mxu1 %v379_v3  ;;  %866 = vperm.xlu0 %1169, %v1273_v14   ;;  %v1207_v14 = vmov 4  }
 0x132   :  { %v340_v10 = vadd.f32 %v1085_v9, %v155_v7  ;;  %v331_v11 = vpop.f32.mrb[15].mxu0  ;;  %1095 = vmatpush3.bf16.msra.mxu1 %v379_v3  ;;  %v357_v15 = vmax.f32 %v337_v5, 0.0 }
 0x133   :  { %v332_v12 = vadd.f32 %v331_v11, %v145_v59  ;;  %1096 = vmatprep.subr.bf16.mxu1 %v380_v1  ;;  %v355_v19 = vmax.f32 %v329_v8, 0.0  ;;  %1170 = vset.pattern.permute.xlu1 %v1206_v44 }
 0x134   :  { %v358_v16 = vmax.f32 %v340_v10, 0.0  ;;  %862 = vperm.xlu1 %1170, %v1286_v17   ;;  %v389_v17 = vpop.permute.xlu1 %388 }
 0x135   :  { %v356_v20 = vmax.f32 %v332_v12, 0.0  ;;  %870 = vperm.xlu0 %1169, %v1291_v18   ;;  %v385_v18 = vpop.permute.xlu0 %384 }
 0x136   :  { %v382_v23 = vpack.c.bf16 %v358_v16, %v357_v15  ;;  %1097 = vmatpush3.bf16.msra.mxu1 %v380_v1 }
 0x137   :  { %v381_v24 = vpack.c.bf16 %v356_v20, %v355_v19 }
 0x138   :  { %1171 = vset.pattern.permute.xlu1 %v1205_v43 }
 0x139   :  { %1098 = vmatprep.subr.bf16.mxu1 %v381_v24  ;;  %649 = vperm.xlu1 %1171, %v1299_v21  }
 0x13a   :  { %1099 = vmatpush3.bf16.msra.mxu1 %v381_v24  ;;  %874 = vperm.xlu0 %1169, %v1299_v21   ;;  %v393_v21 = vpop.permute.xlu1 %392 }
 0x13b   :  { %1100 = vmatprep.subr.bf16.mxu1 %v382_v23 }
 0x13d   :  { %653 = vperm.xlu1 %1171, %v1304_v22  }
 0x13e   :  { %1101 = vmatpush3.bf16.msra.mxu1 %v382_v23  ;;  %878 = vperm.xlu0 %1169, %v1304_v22   ;;  %v397_v22 = vpop.permute.xlu0 %396 }
 0x141   :  { %1103 = vmatmul.mubr.bf16.vlgmr.msra.gmra.mrb[0].mxu1 %v1184_v27  ;;  %657 = vperm.xlu1 %1171, %v1318_v25  }
 0x142   :  { %1106 = vmatprep.mubr.bf16.mxu1 %v1185_v28  ;;  %882 = vperm.xlu0 %1169, %v1318_v25   ;;  %v401_v25 = vpop.permute.xlu1 %400 }
 0x145   :  { %661 = vperm.xlu1 %1171, %v1323_v26  }
 0x146   :  { %886 = vperm.xlu0 %1169, %v1323_v26   ;;  %v405_v26 = vpop.permute.xlu0 %404 }
 0x149   :  { %1107 = vmatmul.mubr.bf16.gmra.mrb[4].mxu1 %v1186_v31  ;;  %665 = vperm.xlu1 %1171, %v1331_v29  }
 0x14a   :  { %1110 = vmatprep.mubr.bf16.mxu1 %v1187_v32  ;;  %890 = vperm.xlu0 %1169, %v1331_v29   ;;  %v409_v29 = vpop.permute.xlu1 %408 }
 0x14d   :  { %669 = vperm.xlu1 %1171, %v1336_v30  }
 0x14e   :  { %894 = vperm.xlu0 %1169, %v1336_v30   ;;  %v417_v49 = vpop.permute.xlu1 %416 }
 0x151   :  { %1111 = vmatmul.mubr.bf16.gmra.mrb[8].mxu1 %v1188_v35  ;;  %673 = vperm.xlu1 %1171, %v1350_v33  }
 0x152   :  { %1114 = vmatprep.mubr.bf16.mxu1 %v1189_v36  ;;  %898 = vperm.xlu0 %1169, %v1350_v33   ;;  %v425_v61 = vpop.permute.xlu1 %424 }
 0x155   :  { %677 = vperm.xlu1 %1171, %v1355_v34  }
 0x156   :  { %902 = vperm.xlu0 %1169, %v1355_v34   ;;  %v433_v9 = vpop.permute.xlu1 %432 }
 0x159   :  { %1115 = vmatmul.mubr.bf16.gmra.mrb[12].mxu1 %v1190_v39  ;;  %681 = vperm.xlu1 %1171, %v1363_v37  }
 0x15a   :  { %1134 = vmatprep.mubr.bf16.mxu1 %v1191_v40  ;;  %906 = vperm.xlu0 %1169, %v1363_v37   ;;  %v413_v37 = vpop.permute.xlu0 %412  ;;  %v441_v31 = vpop.permute.xlu1 %440 }
 0x15d   :  { %685 = vperm.xlu1 %1171, %v1368_v38  }
 0x15e   :  { %910 = vperm.xlu0 %1169, %v1368_v38  }
 0x161   :  { %689 = vperm.xlu1 %1171, %v1382_v41  }
 0x162   :  { %918 = vperm.xlu0 %1169, %v1387_v42  }
 0x165   :  { %693 = vperm.xlu1 %1171, %v1387_v42  }
 0x166   :  { %1174 = vset.pattern.permute.xlu0 %v1207_v14 }
 0x169   :  { %1172 = vset.pattern.permute.xlu1 %v1206_v44 }
 0x16a   :  { %914 = vperm.xlu1 %1172, %v1382_v41  }
 0x16e   :  { %1173 = vset.pattern.permute.xlu1 %v1207_v14 }
 0x16f   :  { %959 = vperm.xlu1 %1173, %v1268_v13   ;;  %v421_v13 = vpop.permute.xlu0 %420 }
 0x173   :  { %v429_v1 = vpop.permute.xlu0 %428 }
 0x177   :  { %v437_v16 = vpop.permute.xlu0 %436 }
 0x17b   :  { %v445_v40 = vpop.permute.xlu0 %444 }
 0x214   :  { %v1104_v30 = vpop.f32.mrb[0].mxu1 }
 0x215   :  { %v538_v33 = vadd.f32 %v1104_v30, %v393_v21  ;;  %v529_v34 = vpop.f32.mrb[1].mxu1 }
 0x216   :  { %v530_v38 = vadd.f32 %v529_v34, %v385_v18  ;;  %v1105_v42 = vpop.f32.mrb[2].mxu1  ;;  %v1193_v34 = vld [vmem:[%s1534_s3 + $0x10] sm:$0xff]  }
 0x217   :  { %v541_v45 = vadd.f32 %v1105_v42, %v397_v22  ;;  %v532_v46 = vpop.f32.mrb[3].mxu1  ;;  %v594_v48 = vmax.f32 %v538_v33, 0.0  ;;  %v1192_v33 = vld [vmem:[%s1534_s3 + $0x8] sm:$0xff]  }
 0x218   :  { %v533_v47 = vadd.f32 %v532_v46, %v389_v17  ;;  %v592_v50 = vmax.f32 %v530_v38, 0.0  ;;  %v1195_v38 = vld [vmem:[%s1534_s3 + $0x20] sm:$0xff]   ;;  %v1196_v42 = vld [vmem:[%s1534_s3 + $0x28] sm:$0xff]   ;;  %v1198_v46 = vld [vmem:[%s1534_s3 + $0x38] sm:$0xff]  }
 0x219   :  { %v595_v41 = vmax.f32 %v541_v45, 0.0  ;;  %v1197_v45 = vld [vmem:[%s1534_s3 + $0x30] sm:$0xff]  }
 0x21a   :  { %v593_v51 = vmax.f32 %v533_v47, 0.0  ;;  %v634_v47 = vpop.permute.xlu1 %633 }
 0x21b   :  { %v625_v52 = vpack.c.bf16 %v595_v41, %v594_v48 }
 0x21c   :  { %v624_v53 = vpack.c.bf16 %v593_v51, %v592_v50  ;;  %v1108_v54 = vpop.f32.mrb[4].mxu1 }
 0x21d   :  { %v554_v55 = vadd.f32 %v1108_v54, %v409_v29  ;;  %v545_v56 = vpop.f32.mrb[5].mxu1 }
 0x21e   :  { %v546_v57 = vadd.f32 %v545_v56, %v401_v25  ;;  %v1109_v58 = vpop.f32.mrb[6].mxu1  ;;  %1118 = vmatprep.subr.bf16.mxu1 %v624_v53  ;;  %v642_v48 = vpop.permute.xlu1 %641 }
 0x21f   :  { %v557_v59 = vadd.f32 %v1109_v58, %v413_v37  ;;  %v548_v60 = vpop.f32.mrb[7].mxu1  ;;  %1119 = vmatpush3.bf16.msra.mxu1 %v624_v53  ;;  %v598_v63 = vmax.f32 %v554_v55, 0.0  ;;  %v1194_v37 = vld [vmem:[%s1534_s3 + $0x18] sm:$0xff]  }
 0x220   :  { %v549_v62 = vadd.f32 %v548_v60, %v405_v26  ;;  %1120 = vmatprep.subr.bf16.mxu1 %v625_v52  ;;  %v596_v2 = vmax.f32 %v546_v57, 0.0 }
 0x221   :  { %v599_v0 = vmax.f32 %v557_v59, 0.0 }
 0x222   :  { %v597_v3 = vmax.f32 %v549_v62, 0.0  ;;  %v646_v41 = vpop.permute.xlu1 %645 }
 0x223   :  { %v627_v4 = vpack.c.bf16 %v599_v0, %v598_v63  ;;  %1121 = vmatpush3.bf16.msra.mxu1 %v625_v52 }
 0x224   :  { %v626_v5 = vpack.c.bf16 %v597_v3, %v596_v2  ;;  %v1112_v6 = vpop.f32.mrb[8].mxu1 }
 0x225   :  { %v570_v7 = vadd.f32 %v1112_v6, %v425_v61  ;;  %v561_v8 = vpop.f32.mrb[9].mxu1 }
 0x226   :  { %v562_v10 = vadd.f32 %v561_v8, %v417_v49  ;;  %v1113_v11 = vpop.f32.mrb[10].mxu1  ;;  %1122 = vmatprep.subr.bf16.mxu1 %v626_v5  ;;  %v638_v49 = vpop.permute.xlu0 %637 }
 0x227   :  { %v573_v12 = vadd.f32 %v1113_v11, %v429_v1  ;;  %v564_v15 = vpop.f32.mrb[11].mxu1  ;;  %1123 = vmatpush3.bf16.msra.mxu1 %v626_v5  ;;  %v602_v20 = vmax.f32 %v570_v7, 0.0  ;;  %v863_v50 = vpop.permute.xlu1 %862 }
 0x228   :  { %v565_v19 = vadd.f32 %v564_v15, %v421_v13  ;;  %1124 = vmatprep.subr.bf16.mxu1 %v627_v4  ;;  %v600_v24 = vmax.f32 %v562_v10, 0.0 }
 0x229   :  { %v603_v23 = vmax.f32 %v573_v12, 0.0 }
 0x22a   :  { %v601_v27 = vmax.f32 %v565_v19, 0.0  ;;  %v859_v51 = vpop.permute.xlu0 %858 }
 0x22b   :  { %v629_v28 = vpack.c.bf16 %v603_v23, %v602_v20  ;;  %1125 = vmatpush3.bf16.msra.mxu1 %v627_v4  ;;  %v650_v52 = vpop.permute.xlu1 %649 }
 0x22c   :  { %v628_v32 = vpack.c.bf16 %v601_v27, %v600_v24  ;;  %v1116_v35 = vpop.f32.mrb[12].mxu1 }
 0x22d   :  { %v586_v36 = vadd.f32 %v1116_v35, %v441_v31  ;;  %v577_v39 = vpop.f32.mrb[13].mxu1 }
 0x22e   :  { %v578_v43 = vadd.f32 %v577_v39, %v433_v9  ;;  %v1117_v44 = vpop.f32.mrb[14].mxu1  ;;  %1126 = vmatprep.subr.bf16.mxu1 %v628_v32  ;;  %v867_v13 = vpop.permute.xlu0 %866 }
 0x22f   :  { %v589_v14 = vadd.f32 %v1117_v44, %v445_v40  ;;  %v580_v17 = vpop.f32.mrb[15].mxu1  ;;  %1127 = vmatpush3.bf16.msra.mxu1 %v628_v32  ;;  %v606_v21 = vmax.f32 %v586_v36, 0.0  ;;  %v654_v53 = vpop.permute.xlu1 %653 }
 0x230   :  { %v581_v18 = vadd.f32 %v580_v17, %v437_v16  ;;  %1128 = vmatprep.subr.bf16.mxu1 %v629_v28  ;;  %v604_v25 = vmax.f32 %v578_v43, 0.0 }
 0x231   :  { %v607_v22 = vmax.f32 %v589_v14, 0.0 }
 0x232   :  { %v605_v26 = vmax.f32 %v581_v18, 0.0  ;;  %v871_v54 = vpop.permute.xlu0 %870 }
 0x233   :  { %v631_v29 = vpack.c.bf16 %v607_v22, %v606_v21  ;;  %1129 = vmatpush3.bf16.msra.mxu1 %v629_v28  ;;  %v658_v55 = vpop.permute.xlu1 %657 }
 0x234   :  { %v630_v30 = vpack.c.bf16 %v605_v26, %v604_v25 }
 0x236   :  { %1130 = vmatprep.subr.bf16.mxu1 %v630_v30  ;;  %v875_v56 = vpop.permute.xlu0 %874 }
 0x237   :  { %1131 = vmatpush3.bf16.msra.mxu1 %v630_v30  ;;  %v662_v57 = vpop.permute.xlu1 %661 }
 0x238   :  { %1132 = vmatprep.subr.bf16.mxu1 %v631_v29 }
 0x23a   :  { %v879_v58 = vpop.permute.xlu0 %878 }
 0x23b   :  { %1133 = vmatpush3.bf16.msra.mxu1 %v631_v29  ;;  %v666_v59 = vpop.permute.xlu1 %665 }
 0x23e   :  { %1135 = vmatmul.mubr.bf16.vlgmr.msra.gmra.mrb[16].mxu1 %v1192_v33  ;;  %v883_v60 = vpop.permute.xlu0 %882 }
 0x23f   :  { %1138 = vmatprep.mubr.bf16.mxu1 %v1193_v34  ;;  %v670_v61 = vpop.permute.xlu1 %669 }
 0x242   :  { %v887_v62 = vpop.permute.xlu0 %886 }
 0x243   :  { %v674_v63 = vpop.permute.xlu1 %673 }
 0x246   :  { %1139 = vmatmul.mubr.bf16.gmra.mrb[20].mxu1 %v1194_v37  ;;  %v891_v0 = vpop.permute.xlu0 %890 }
 0x247   :  { %1142 = vmatprep.mubr.bf16.mxu1 %v1195_v38  ;;  %v678_v6 = vpop.permute.xlu1 %677 }
 0x24a   :  { %v895_v11 = vpop.permute.xlu0 %894 }
 0x24b   :  { %v682_v24 = vpop.permute.xlu1 %681 }
 0x24e   :  { %1143 = vmatmul.mubr.bf16.gmra.mrb[24].mxu1 %v1196_v42  ;;  %v899_v39 = vpop.permute.xlu0 %898 }
 0x24f   :  { %1146 = vmatprep.mubr.bf16.mxu1 %v1197_v45  ;;  %v686_v29 = vpop.permute.xlu1 %685 }
 0x252   :  { %v903_v38 = vpop.permute.xlu0 %902 }
 0x256   :  { %1147 = vmatmul.mubr.bf16.gmra.mrb[28].mxu1 %v1198_v46 }
 0x311   :  { %v1136_v1 = vpop.f32.mrb[16].mxu1 }
 0x312   :  { %v778_v2 = vpop.f32.mrb[17].mxu1  ;;  %v787_v3 = vadd.f32 %v1136_v1, %v642_v48 }
 0x313   :  { %v779_v4 = vadd.f32 %v778_v2, %v634_v47  ;;  %v1137_v5 = vpop.f32.mrb[18].mxu1 }
 0x314   :  { %v790_v7 = vadd.f32 %v1137_v5, %v646_v41  ;;  %v781_v8 = vpop.f32.mrb[19].mxu1  ;;  %v843_v12 = vmax.f32 %v787_v3, 0.0 }
 0x315   :  { %v841_v9 = vmax.f32 %v779_v4, 0.0  ;;  %v782_v10 = vadd.f32 %v781_v8, %v638_v49 }
 0x316   :  { %v844_v16 = vmax.f32 %v790_v7, 0.0  ;;  %v923_v28 = vmul.f32 %v867_v13, %v843_v12 }
 0x317   :  { %v842_v15 = vmax.f32 %v782_v10, 0.0  ;;  %v921_v19 = vmul.f32 %v859_v51, %v841_v9 }
 0x318   :  { %v924_v40 = vmul.f32 %v871_v54, %v844_v16  ;;  %v690_v54 = vpop.permute.xlu1 %689 }
 0x319   :  { %v922_v20 = vmul.f32 %v863_v50, %v842_v15  ;;  %v1140_v23 = vpop.f32.mrb[20].mxu1 }
 0x31a   :  { %v794_v27 = vpop.f32.mrb[21].mxu1  ;;  %v803_v32 = vadd.f32 %v1140_v23, %v658_v55 }
 0x31b   :  { %v937_v31 = vadd.f32 %v922_v20, %v921_v19  ;;  %v795_v35 = vadd.f32 %v794_v27, %v650_v52  ;;  %v1141_v36 = vpop.f32.mrb[22].mxu1 }
 0x31c   :  { %v797_v43 = vpop.f32.mrb[23].mxu1  ;;  %v806_v17 = vadd.f32 %v1141_v36, %v662_v57  ;;  %v847_v21 = vmax.f32 %v803_v32, 0.0 }
 0x31d   :  { %v938_v44 = vadd.f32 %v937_v31, %v923_v28  ;;  %v845_v14 = vmax.f32 %v795_v35, 0.0  ;;  %v798_v18 = vadd.f32 %v797_v43, %v654_v53 }
 0x31e   :  { %v848_v33 = vmax.f32 %v806_v17, 0.0  ;;  %v927_v45 = vmul.f32 %v883_v60, %v847_v21 }
 0x31f   :  { %v925_v22 = vmul.f32 %v875_v56, %v845_v14  ;;  %v939_v25 = vadd.f32 %v938_v44, %v924_v40  ;;  %v846_v26 = vmax.f32 %v798_v18, 0.0 }
 0x320   :  { %v928_v51 = vmul.f32 %v887_v62, %v848_v33  ;;  %v694_v62 = vpop.permute.xlu1 %693 }
 0x321   :  { %v940_v30 = vadd.f32 %v939_v25, %v925_v22  ;;  %v926_v34 = vmul.f32 %v879_v58, %v846_v26  ;;  %v1144_v37 = vpop.f32.mrb[24].mxu1  ;;  %v907_v58 = vpop.permute.xlu0 %906 }
 0x322   :  { %v810_v42 = vpop.f32.mrb[25].mxu1  ;;  %v819_v47 = vadd.f32 %v1144_v37, %v674_v63 }
 0x323   :  { %v941_v46 = vadd.f32 %v940_v30, %v926_v34  ;;  %v811_v48 = vadd.f32 %v810_v42, %v666_v59  ;;  %v1145_v41 = vpop.f32.mrb[26].mxu1 }
 0x324   :  { %v822_v49 = vadd.f32 %v1145_v41, %v678_v6  ;;  %v813_v50 = vpop.f32.mrb[27].mxu1  ;;  %v851_v55 = vmax.f32 %v819_v47, 0.0 }
 0x325   :  { %v942_v52 = vadd.f32 %v941_v46, %v927_v45  ;;  %v849_v13 = vmax.f32 %v811_v48, 0.0  ;;  %v814_v53 = vadd.f32 %v813_v50, %v670_v61  ;;  %v911_v16 = vpop.permute.xlu0 %910 }
 0x326   :  { %v852_v2 = vmax.f32 %v822_v49, 0.0  ;;  %v931_v63 = vmul.f32 %v899_v39, %v851_v55 }
 0x327   :  { %v929_v56 = vmul.f32 %v891_v0, %v849_v13  ;;  %v943_v57 = vadd.f32 %v942_v52, %v928_v51  ;;  %v850_v1 = vmax.f32 %v814_v53, 0.0 }
 0x328   :  { %v932_v9 = vmul.f32 %v903_v38, %v852_v2 }
 0x329   :  { %v944_v3 = vadd.f32 %v943_v57, %v929_v56  ;;  %v930_v4 = vmul.f32 %v895_v11, %v850_v1  ;;  %v1148_v60 = vpop.f32.mrb[28].mxu1  ;;  %v915_v11 = vpop.permute.xlu1 %914 }
 0x32a   :  { %v826_v5 = vpop.f32.mrb[29].mxu1  ;;  %v835_v7 = vadd.f32 %v1148_v60, %v690_v54 }
 0x32b   :  { %v945_v59 = vadd.f32 %v944_v3, %v930_v4  ;;  %v827_v6 = vadd.f32 %v826_v5, %v682_v24  ;;  %v1149_v8 = vpop.f32.mrb[30].mxu1  ;;  %v919_v24 = vpop.permute.xlu0 %918 }
 0x32c   :  { %v829_v10 = vpop.f32.mrb[31].mxu1  ;;  %v838_v15 = vadd.f32 %v1149_v8, %v694_v62  ;;  %v855_v19 = vmax.f32 %v835_v7, 0.0 }
 0x32d   :  { %v946_v61 = vadd.f32 %v945_v59, %v931_v63  ;;  %v853_v12 = vmax.f32 %v827_v6, 0.0  ;;  %v830_v0 = vadd.f32 %v829_v10, %v686_v29  ;;  %v960_v22 = vpop.permute.xlu1 %959 }
 0x32e   :  { %v856_v31 = vmax.f32 %v838_v15, 0.0  ;;  %v935_v35 = vmul.f32 %v915_v11, %v855_v19 }
 0x32f   :  { %v933_v20 = vmul.f32 %v907_v58, %v853_v12  ;;  %v947_v23 = vadd.f32 %v946_v61, %v932_v9  ;;  %v854_v27 = vmax.f32 %v830_v0, 0.0 }
 0x330   :  { %v936_v39 = vmul.f32 %v919_v24, %v856_v31 }
 0x331   :  { %v948_v28 = vadd.f32 %v947_v23, %v933_v20  ;;  %v934_v32 = vmul.f32 %v911_v16, %v854_v27 }
 0x333   :  { %v949_v36 = vadd.f32 %v948_v28, %v934_v32 }
 0x335   :  { %v950_v40 = vadd.f32 %v949_v36, %v935_v35 }
 0x337   :  { %v951_v43 = vadd.f32 %v950_v40, %v936_v39 }
 0x339   :  { %v952_v44 = vrot.slane %v951_v43, 4 }
 0x33b   :  { %v953_v14 = vadd.f32 %v952_v44, %v951_v43 }
 0x33d   :  { %v954_v17 = vrot.slane %v953_v14, 2 }
 0x33f   :  { %v955_v18 = vadd.f32 %v954_v17, %v953_v14 }
 0x341   :  { %v956_v21 = vrot.slane %v955_v18, 1 }
 0x343   :  { %v957_v25 = vadd.f32 %v956_v21, %v955_v18 }
 0x345   :  { %v962_v26 = vadd.f32 %v960_v22, %v957_v25 }
 0x347   :  { %v963_v29 = vsub.f32 0.0, %v962_v26 }
 0x349   :  { %v964_v30 = vmul.f32 1.442695, %v963_v29 }
 0x34b   :  { %1199 = vpow2.f32 %v964_v30 }
 0x355   :  { %v1200_v33 = vpop.eup %1199 }
 0x356   :  { %v966_v34 = vadd.f32 1.0, %v1200_v33 }
 0x358   :  { %1201 = vrcp.f32 %v966_v34 }
 0x362   :  { %v1202_v37 = vpop.eup %1201 }
 0x363   :  { %969 = vst [vmem:[%s1535_s5] sm:$0x1] %v1202_v37 }

</bundles_post_ra>
